<compile_context>
chip_gen: v5e
topology: v5e:2x2
jax: 0.10.0
libtpu: 0.0.40
codegen_flags: <defaults>
</compile_context>

<pallas_src>
import functools

import numpy as np
import jax
import jax.numpy as jnp
from jax.experimental import pallas as pl
from jax.experimental.pallas import tpu as pltpu


# --------------------------------------------------------------------------
# bior4.4 (CDF 9/7) filter bank, pywt convention (length-10, zero padded)
# --------------------------------------------------------------------------
_DEC_LO = np.array([0.0, 0.03782845550699535, -0.02384946501938000,
                    -0.11062440441842342, 0.37740285561265380, 0.85269867900940344,
                    0.37740285561265380, -0.11062440441842342, -0.02384946501938000,
                    0.03782845550699535], dtype=np.float64)
_DEC_HI = np.array([0.0, -0.06453888262893856, 0.04068941760955867,
                    0.41809227322221221, -0.78848561640566730, 0.41809227322221221,
                    0.04068941760955867, -0.06453888262893856, 0.0, 0.0],
                   dtype=np.float64)
_REC_LO = np.array([0.0, -0.06453888262893856, -0.04068941760955867,
                    0.41809227322221221, 0.78848561640566730, 0.41809227322221221,
                    -0.04068941760955867, -0.06453888262893856, 0.0, 0.0],
                   dtype=np.float64)
_REC_HI = np.array([0.0, 0.03782845550699535, 0.02384946501938000,
                    -0.11062440441842342, -0.37740285561265380, 0.85269867900940344,
                    -0.37740285561265380, -0.11062440441842342, 0.02384946501938000,
                    0.03782845550699535], dtype=np.float64)

_VMEM_LIMIT = 64 * 1024 * 1024  # explicit budget; tiles below stay far under this


def _build_per_matrices(n):
    """1-D 'periodization' analysis matrix A (rows: [lo; hi]) and synthesis S,
    following pytorch_wavelets afb1d/sfb1d phase conventions."""
    L = _DEC_LO.shape[0]
    L2 = L // 2
    n2 = n // 2
    A = np.zeros((n, n), np.float64)
    S = np.zeros((n, n), np.float64)
    for k in range(n2):
        for m in range(L):
            A[k, (2 * k + L2 - m) % n] += _DEC_LO[m]
            A[n2 + k, (2 * k + L2 - m) % n] += _DEC_HI[m]
            S[(2 * k + m - (L2 - 1)) % n, k] += _REC_LO[m]
            S[(2 * k + m - (L2 - 1)) % n, n2 + k] += _REC_HI[m]
    return jnp.asarray(A, jnp.float32), jnp.asarray(S, jnp.float32)


# --------------------------------------------------------------------------
# Tile-size helpers (static, trace-time)
# --------------------------------------------------------------------------
def _pick_row_tile(m, target=1024):
    """Largest multiple-of-8 divisor of m that is <= target (or m itself)."""
    if m <= target:
        return m
    t = target - (target % 8)
    for cand in range(t, 7, -8):
        if m % cand == 0:
            return cand
    return m


def _pick_batch_tile(bc, n, max_bytes=1 << 20, cap=32):
    """Largest divisor of bc such that one (tb, n, n) f32 block stays small."""
    limit = max(1, min(bc, cap, max_bytes // max(1, n * n * 4)))
    for cand in range(limit, 0, -1):
        if bc % cand == 0:
            return cand
    return 1


# --------------------------------------------------------------------------
# Pallas kernels
# --------------------------------------------------------------------------
def _sandwich_kernel(ml_ref, mrt_ref, x_ref, o_ref):
    # out[b] = ML @ x[b] @ MR^T  (MR^T passed pre-transposed from the host),
    # batched over a tile of images via batched einsum (MXU, f32 accumulate).
    x = x_ref[...]                                           # (tb, n, n)
    mrt = jnp.broadcast_to(mrt_ref[...], x.shape)
    ml = jnp.broadcast_to(ml_ref[...], x.shape)
    t = jnp.einsum('bij,bjk->bik', x, mrt, preferred_element_type=jnp.float32)
    o_ref[...] = jnp.einsum('bij,bjk->bik', ml, t, preferred_element_type=jnp.float32)


def _synth_final_kernel(ml_ref, mrt_ref, x_ref, orig_ref, o_ref, loss_ref):
    # Last IDWT level: sandwich + fused Hardtanh clamp + rec_loss partial sum.
    x = x_ref[...]                                           # (tb, n, n)
    mrt = jnp.broadcast_to(mrt_ref[...], x.shape)
    ml = jnp.broadcast_to(ml_ref[...], x.shape)
    t = jnp.einsum('bij,bjk->bik', x, mrt, preferred_element_type=jnp.float32)
    y = jnp.einsum('bij,bjk->bik', ml, t, preferred_element_type=jnp.float32)
    d = orig_ref[...] - y                                    # loss on UNclamped recon
    loss_ref[0, 0] = jnp.sum(d * d)
    o_ref[...] = jnp.clip(y, -0.5, 0.5)                      # Hardtanh(-0.5, 0.5)


def _erfinv(x):
    # Giles' single-precision rational approximation (only exp/log/sqrt/mul ops).
    w = -jnp.log((1.0 - x) * (1.0 + x))
    w1 = w - 2.5
    p1 = 2.81022636e-08
    for c in (3.43273939e-07, -3.5233877e-06, -4.39150654e-06, 0.00021858087,
              -0.00125372503, -0.00417768164, 0.246640727, 1.50140941):
        p1 = c + p1 * w1
    w2 = jnp.sqrt(w) - 3.0
    p2 = -0.000200214257
    for c in (0.000100950558, 0.00134934322, -0.00367342844, 0.00573950773,
              -0.0076224613, 0.00943887047, 1.00167406, 2.83297682):
        p2 = c + p2 * w2
    return jnp.where(w < 5.0, p1, p2) * x


def _encdec_kernel(x_ref, ew_ref, eb_ref, dw_ref, db_ref,
                   xhat_ref, tf_ref, *, scale, latent_max):
    # Fused: 1x1 conv encoder + ToUniform + Round (eval) + ToNormal + 1x1 conv decoder,
    # plus the per-tile tf_loss partial sum.  The latent never leaves VMEM.
    x = x_ref[...]                                                   # (tm, cin)
    y = jnp.dot(x, ew_ref[...], preferred_element_type=jnp.float32) + eb_ref[...]
    y = y * np.float32(1.0 / scale)
    y = 0.5 * (1.0 + jax.lax.erf(y * np.float32(1.0 / np.sqrt(2.0))))   # Normal CDF
    y = (y - 0.5) * np.float32(2.0 * latent_max)
    y = jnp.round(y)                                                 # eval-mode Round
    z = y * np.float32(1.0 / (2.0 * latent_max)) + 0.5
    z = jnp.clip(z, 0.0001, 0.9999)                                  # Hardtanh(1e-4, 0.9999)
    z = np.float32(np.sqrt(2.0)) * _erfinv(2.0 * z - 1.0)            # Normal icdf
    z = z * np.float32(scale)
    xhat = jnp.dot(z, dw_ref[...], preferred_element_type=jnp.float32) + db_ref[...]
    xhat_ref[...] = xhat
    d = x - xhat
    tf_ref[0, 0] = jnp.sum(d * d)


# --------------------------------------------------------------------------
# pallas_call wrappers
# --------------------------------------------------------------------------
def _mat_sandwich(x, ml, mrt):
    """x: (BC, N, N); ml, mrt: (N, N). Returns ml @ x[i] @ mrt per i (batched tiles)."""
    bc, n, _ = x.shape
    tb = _pick_batch_tile(bc, n)
    nt = bc // tb
    return pl.pallas_call(
        _sandwich_kernel,
        out_shape=jax.ShapeDtypeStruct((bc, n, n), jnp.float32),
        grid=(nt,),
        in_specs=[
            pl.BlockSpec((n, n), lambda i: (0, 0)),
            pl.BlockSpec((n, n), lambda i: (0, 0)),
            pl.BlockSpec((tb, n, n), lambda i: (i, 0, 0)),
        ],
        out_specs=pl.BlockSpec((tb, n, n), lambda i: (i, 0, 0)),
        compiler_params=pltpu.CompilerParams(
            dimension_semantics=("parallel",),
            vmem_limit_bytes=_VMEM_LIMIT),
    )(ml, mrt, x)


def _mat_sandwich_final(x, ml, mrt, orig):
    """Last-level synthesis: clamped output + per-tile sum((orig - recon)^2)."""
    bc, n, _ = x.shape
    tb = _pick_batch_tile(bc, n)
    nt = bc // tb
    y, partial = pl.pallas_call(
        _synth_final_kernel,
        out_shape=(jax.ShapeDtypeStruct((bc, n, n), jnp.float32),
                   jax.ShapeDtypeStruct((nt, 1), jnp.float32)),
        grid=(nt,),
        in_specs=[
            pl.BlockSpec((n, n), lambda i: (0, 0)),
            pl.BlockSpec((n, n), lambda i: (0, 0)),
            pl.BlockSpec((tb, n, n), lambda i: (i, 0, 0)),
            pl.BlockSpec((tb, n, n), lambda i: (i, 0, 0)),
        ],
        out_specs=(pl.BlockSpec((tb, n, n), lambda i: (i, 0, 0)),
                   pl.BlockSpec((1, 1), lambda i: (i, 0),
                                memory_space=pltpu.MemorySpace.SMEM)),
        compiler_params=pltpu.CompilerParams(
            dimension_semantics=("parallel",),
            vmem_limit_bytes=_VMEM_LIMIT),
    )(ml, mrt, x, orig)
    return y, partial


def _encdec_rows(x_rows, enc_w_t, enc_b, dec_w_t, dec_b, *, scale, latent_max):
    """Fused encoder->Round->decoder over row tiles; returns xhat rows and tf partials."""
    m, cin = x_rows.shape
    lat = enc_w_t.shape[1]
    tm = _pick_row_tile(m)
    nt = m // tm
    kernel = functools.partial(_encdec_kernel, scale=scale, latent_max=latent_max)
    xhat, tf = pl.pallas_call(
        kernel,
        out_shape=(jax.ShapeDtypeStruct((m, cin), jnp.float32),
                   jax.ShapeDtypeStruct((nt, 1), jnp.float32)),
        grid=(nt,),
        in_specs=[
            pl.BlockSpec((tm, cin), lambda i: (i, 0)),
            pl.BlockSpec((cin, lat), lambda i: (0, 0)),
            pl.BlockSpec((1, lat), lambda i: (0, 0)),
            pl.BlockSpec((lat, cin), lambda i: (0, 0)),
            pl.BlockSpec((1, cin), lambda i: (0, 0)),
        ],
        out_specs=(pl.BlockSpec((tm, cin), lambda i: (i, 0)),
                   pl.BlockSpec((1, 1), lambda i: (i, 0),
                                memory_space=pltpu.MemorySpace.SMEM)),
        compiler_params=pltpu.CompilerParams(
            dimension_semantics=("parallel",),
            vmem_limit_bytes=_VMEM_LIMIT),
    )(x_rows, enc_w_t, enc_b, dec_w_t, dec_b)
    return xhat, tf


# --------------------------------------------------------------------------
# Wavelet analysis / synthesis glue (subband bookkeeping in plain JAX,
# the filtering itself runs in the Pallas sandwich kernels).
# --------------------------------------------------------------------------
def _analysis_one_level(x, A):
    b, c, n, _ = x.shape
    y = _mat_sandwich(x.reshape(b * c, n, n), A, A.T).reshape(b, c, n, n)
    n2 = n // 2
    ll = y[:, :, :n2, :n2]
    lh = y[:, :, :n2, n2:]
    hl = y[:, :, n2:, :n2]
    hh = y[:, :, n2:, n2:]
    X = jnp.stack([ll, lh, hl, hh], axis=2)          # (b, c, 4, n2, n2)
    return X.reshape(b, c * 4, n2, n2)               # '(c f)' channel packing


def _synthesis_one_level(X, S, orig=None):
    b, c4, n2, _ = X.shape
    c = c4 // 4
    Xf = X.reshape(b, c, 4, n2, n2)
    top = jnp.concatenate([Xf[:, :, 0], Xf[:, :, 1]], axis=-1)
    bot = jnp.concatenate([Xf[:, :, 2], Xf[:, :, 3]], axis=-1)
    coef = jnp.concatenate([top, bot], axis=-2)      # (b, c, 2*n2, 2*n2)
    n = 2 * n2
    if orig is None:
        y = _mat_sandwich(coef.reshape(b * c, n, n), S, S.T)
        return y.reshape(b, c, n, n)
    y, partial = _mat_sandwich_final(coef.reshape(b * c, n, n), S, S.T,
                                     orig.reshape(b * c, n, n))
    return y.reshape(b, c, n, n), partial


# --------------------------------------------------------------------------
# Parameters + forward
# --------------------------------------------------------------------------
def init_params(key, channels, J, latent_dim, spatial):
    cin = channels * (4 ** J)
    k1, k2, k3, k4 = jax.random.split(key, 4)
    be = 1.0 / np.sqrt(cin)
    enc_w = jax.random.uniform(k1, (latent_dim, cin), jnp.float32, -be, be)
    enc_b = jax.random.uniform(k2, (latent_dim,), jnp.float32, -be, be)
    bd = 1.0 / np.sqrt(latent_dim)
    dec_w = jax.random.uniform(k3, (cin, latent_dim), jnp.float32, -bd, bd)
    dec_b = jax.random.uniform(k4, (cin,), jnp.float32, -bd, bd)
    wavelet = {}
    n = spatial
    for _ in range(J):
        wavelet[n] = _build_per_matrices(n)
        n //= 2
    return dict(enc_w_t=enc_w.T, enc_b=enc_b.reshape(1, -1),
                dec_w_t=dec_w.T, dec_b=dec_b.reshape(1, -1),
                wavelet=wavelet)


def linear_codec2d_forward(x, params, *, J, latent_bits):
    assert J >= 1, "J >= 1 required (final IDWT level carries the fused clamp/loss)"
    latent_max = 2.0 ** (latent_bits - 1) - 1.0 + 0.5 - 0.001
    scale = (2.0 ** (latent_bits - 1) - 1.0) / 1.85

    # wavelet analysis (J levels)
    X = x
    for _ in range(J):
        A, _ = params["wavelet"][X.shape[-1]]
        X = _analysis_one_level(X, A)

    # fused encoder -> Round -> decoder (+ tf_loss partials), tiled over rows
    b, cin, hs, ws = X.shape
    x_rows = jnp.transpose(X, (0, 2, 3, 1)).reshape(b * hs * ws, cin)
    xhat_rows, tf_partials = _encdec_rows(
        x_rows, params["enc_w_t"], params["enc_b"],
        params["dec_w_t"], params["dec_b"],
        scale=scale, latent_max=latent_max)
    tf_loss = jnp.sum(tf_partials) / float(x_rows.shape[0] * x_rows.shape[1])
    X_hat = jnp.transpose(xhat_rows.reshape(b, hs, ws, cin), (0, 3, 1, 2))

    # wavelet synthesis (J levels); last level fuses Hardtanh clamp + rec_loss
    xh = X_hat
    rec_partials = None
    for lvl in range(J):
        _, S = params["wavelet"][2 * xh.shape[-1]]
        if lvl == J - 1:
            xh, rec_partials = _synthesis_one_level(xh, S, orig=x)
        else:
            xh = _synthesis_one_level(xh, S)
    rec_loss = jnp.sum(rec_partials) / float(x.size)

    return xh, rec_loss, tf_loss


if __name__ == "__main__":
    channels, J, latent_dim, latent_bits = 4, 2, 8, 5
    B, H, W = 2, 16, 16

    key = jax.random.PRNGKey(0)
    kx, kp = jax.random.split(key)
    x = jax.random.uniform(kx, (B, channels, H, W), jnp.float32, -0.5, 0.5)
    params = init_params(kp, channels, J, latent_dim, H)

    x_hat, rec_loss, tf_loss = linear_codec2d_forward(
        x, params, J=J, latent_bits=latent_bits)
    jax.block_until_ready((x_hat, rec_loss, tf_loss))

    assert x_hat.shape == (B, channels, H, W)
    assert np.isfinite(float(rec_loss)) and np.isfinite(float(tf_loss))
    assert float(jnp.max(jnp.abs(x_hat))) <= 0.5 + 1e-6
    print("KERNEL_OK")
</pallas_src>

<mosaic_0001>
module attributes {stable_mosaic.version = 11 : i64} {
  func.func @_sandwich_kernel(%arg0: i32, %arg1: memref<16x16xf32, #tpu.memory_space<vmem>>, %arg2: memref<16x16xf32, #tpu.memory_space<vmem>>, %arg3: memref<8x16x16xf32, #tpu.memory_space<vmem>>, %arg4: memref<8x16x16xf32, #tpu.memory_space<vmem>>) attributes {dimension_semantics = [#tpu.dimension_semantics<parallel>], iteration_bounds = array<i64: 1>, scalar_prefetch = 0 : i64, scratch_operands = 0 : i64, tpu.core_type = #tpu.core_type<tc>, window_params = [{pipeline_mode = #tpu.pipeline_mode<synchronous>, transform_indices = @transform_0, window_bounds = array<i64: 16, 16>}, {pipeline_mode = #tpu.pipeline_mode<synchronous>, transform_indices = @transform_1, window_bounds = array<i64: 16, 16>}, {transform_indices = @transform_2, window_bounds = array<i64: 8, 16, 16>}, {transform_indices = @transform_3, window_bounds = array<i64: 8, 16, 16>}]} {
    %c0 = arith.constant 0 : index
    %c0_0 = arith.constant 0 : index
    %c0_1 = arith.constant 0 : index
    %0 = vector.load %arg3[%c0, %c0_0, %c0_1] : memref<8x16x16xf32, #tpu.memory_space<vmem>>, vector<8x16x16xf32>
    %c0_2 = arith.constant 0 : index
    %c0_3 = arith.constant 0 : index
    %1 = vector.load %arg2[%c0_2, %c0_3] : memref<16x16xf32, #tpu.memory_space<vmem>>, vector<16x16xf32>
    %2 = vector.shape_cast %1 : vector<16x16xf32> to vector<1x16x16xf32>
    %3 = vector.broadcast %2 : vector<1x16x16xf32> to vector<8x16x16xf32>
    %c0_4 = arith.constant 0 : index
    %c0_5 = arith.constant 0 : index
    %4 = vector.load %arg1[%c0_4, %c0_5] : memref<16x16xf32, #tpu.memory_space<vmem>>, vector<16x16xf32>
    %5 = vector.shape_cast %4 : vector<16x16xf32> to vector<1x16x16xf32>
    %6 = vector.broadcast %5 : vector<1x16x16xf32> to vector<8x16x16xf32>
    "tpu.trace_start"() <{level = 10 : i32, message = "bij,bjk->bik"}> : () -> ()
    %cst = arith.constant dense<0.000000e+00> : vector<8x16x16xf32>
    %7 = tpu.matmul %0, %3, %cst {dimension_numbers = #tpu.dot_dimension_numbers<[2], [1], [1], [2], [0, 0, 0, 1, 1, 2], [0], [0]>} : vector<8x16x16xf32>, vector<8x16x16xf32>, vector<8x16x16xf32> -> vector<8x16x16xf32>
    %cst_6 = arith.constant dense<0.000000e+00> : vector<8x16x16xf32>
    %8 = tpu.matmul %6, %7, %cst_6 {dimension_numbers = #tpu.dot_dimension_numbers<[2], [1], [1], [2], [0, 0, 0, 1, 1, 2], [0], [0]>} : vector<8x16x16xf32>, vector<8x16x16xf32>, vector<8x16x16xf32> -> vector<8x16x16xf32>
    "tpu.trace_stop"() : () -> ()
    %c0_7 = arith.constant 0 : index
    %c0_8 = arith.constant 0 : index
    %c0_9 = arith.constant 0 : index
    %9 = vector.load %arg4[%c0_7, %c0_8, %c0_9] : memref<8x16x16xf32, #tpu.memory_space<vmem>>, vector<8x16x16xf32>
    tpu.vector_store %arg4[%c0_7, %c0_8, %c0_9], %8 {strides = array<i32>} : memref<8x16x16xf32, #tpu.memory_space<vmem>>, vector<8x16x16xf32>,
    return
  }
  func.func @transform_0(%arg0: i32) -> (i32, i32) {
    %c0_i32 = arith.constant 0 : i32
    %c0_i32_0 = arith.constant 0 : i32
    %c0_i32_1 = arith.constant 0 : i32
    return %c0_i32, %c0_i32_0 : i32, i32
  }
  func.func @transform_1(%arg0: i32) -> (i32, i32) {
    %c0_i32 = arith.constant 0 : i32
    %c0_i32_0 = arith.constant 0 : i32
    %c0_i32_1 = arith.constant 0 : i32
    return %c0_i32, %c0_i32_0 : i32, i32
  }
  func.func @transform_2(%arg0: i32) -> (i32, i32, i32) {
    %c0_i32 = arith.constant 0 : i32
    %c0_i32_0 = arith.constant 0 : i32
    %c0_i32_1 = arith.constant 0 : i32
    return %arg0, %c0_i32, %c0_i32_0 : i32, i32, i32
  }
  func.func @transform_3(%arg0: i32) -> (i32, i32, i32) {
    %c0_i32 = arith.constant 0 : i32
    %c0_i32_0 = arith.constant 0 : i32
    %c0_i32_1 = arith.constant 0 : i32
    return %arg0, %c0_i32, %c0_i32_0 : i32, i32, i32
  }
}

</mosaic_0001>

<bundles_post_ra>
// kernel: tpu_custom_call.1
= control target key start
LH: loop header
LB: loop body
LE: loop exit
PB: predicated region body
PF: predicated region fallthrough
CT: control target
= control target key end

     0   :  { %8 = vsyncpa [#allocation3], 0  ;;  %s779_s0 = inlined_call_operand.hbm [shape: f32[16,16], index: 0, kind: input, shape index: {}]   ;;  %s780_s1 = inlined_call_operand.hbm [shape: f32[16,16], index: 1, kind: input, shape index: {}]   ;;  %s781_s2 = inlined_call_operand.hbm [shape: f32[8,16,16], index: 2, kind: input, shape index: {}]   ;;  %s782_s3 = inlined_call_operand.hbm [shape: f32[8,16,16], index: 3, kind: output, shape index: {}]  }
   0x1   :  { %9 = vsyncpa [#allocation6], 0 }
   0x2   :  { %10 = vsyncpa [#allocation4], 0  ;;  %s28_s14 = sshll.u32 %s780_s1, 4  ;;  %s681_s15 = smov [#allocation5]   ;;  %s29_s14 = int_to_ptr.hbm [resolvable:$true] %s28_s14 }
   0x3   :  { %s30_s16 = sshll.u32 %s681_s15, 4  ;;  %s15_s19 = sshll.u32 %s779_s0, 4  ;;  %s31_s16 = int_to_ptr.vmem [resolvable:$true] %s30_s16  ;;  %s16_s19 = int_to_ptr.hbm [resolvable:$true] %s15_s19 }
   0x4   :  { %s682_s20 = smov 128   ;;  %s683_s21 = smov 8  }
   0x5   :  { %36 = dma.hbm_to_vmem [thread:$0]  %s29_s14, 256, %s31_s16, [#allocation6], %s682_s20, %s682_s20, %s683_s21  }
   0x6   :  { %s684_s22 = smov [#allocation2]   ;;  %s41_s1 = sshll.u32 %s781_s2, 4  ;;  %s42_s1 = int_to_ptr.hbm [resolvable:$true] %s41_s1 }
   0x7   :  { %s17_s23 = sshll.u32 %s684_s22, 4  ;;  %s685_s0 = smov [#allocation7]   ;;  %s18_s23 = int_to_ptr.vmem [resolvable:$true] %s17_s23 }
   0x8   :  { %23 = dma.hbm_to_vmem [thread:$0]  %s16_s19, 256, %s18_s23, [#allocation3], %s682_s20, %s682_s20, %s683_s21  }
   0x9   :  { %s43_s26 = sshll.u32 %s685_s0, 4  ;;  %s44_s26 = int_to_ptr.vmem [resolvable:$true] %s43_s26 }
   0xa   :  { %49 = dma.hbm_to_vmem [thread:$0]  %s42_s1, 2048, %s44_s26, [#allocation6], %s682_s20, %s682_s20, %s683_s21  }
   0xb   :  { %675 = dma.done.wait [#allocation3], 256  }
   0xc   :  { %676 = vsyncadd [#allocation3], 4294967040 }
   0xd   :  { %677 = dma.done.wait [#allocation6], 2304  }
   0xe   :  { %678 = vsyncadd [#allocation6], 4294964992  ;;  %v79_v0 = vld [vmem:[#allocation5 + $0x8] sm:$0xff]  ;;  %v78_v1 = vld [vmem:[#allocation5] sm:$0xff]  ;;  %vm82_vm0 = vcmask 130048   ;;  %s686_s2 = smov [#allocation8]  }
   0xf   :  { %161 = vmatpush.msra.mxu2 %v79_v0  ;;  %190 = vmatpush.msra.mxu3 %v79_v0  ;;  %v66_v2 = vld [vmem:[#allocation7 + $0x20] sm:$0xff]  ;;  %v68_v3 = vld [vmem:[#allocation7 + $0x30] sm:$0xff]  ;;  %v67_v6 = vld [vmem:[#allocation7 + $0x28] sm:$0xff]  ;;  %s525_s27 = sshll.u32 %s686_s2, 4  ;;  %s527_s30 = sshll.u32 %s782_s3, 4  ;;  %s526_s27 = int_to_ptr.vmem [resolvable:$true] %s525_s27  ;;  %s528_s30 = int_to_ptr.hbm [resolvable:$true] %s527_s30 }
  0x10   :  { %103 = vmatpush.msra.mxu0 %v79_v0  ;;  %132 = vmatpush.msra.mxu1 %v79_v0  ;;  %v62_v4 = vld [vmem:[#allocation7] sm:$0xff]  ;;  %v64_v5 = vld [vmem:[#allocation7 + $0x10] sm:$0xff]  ;;  %v69_v7 = vld [vmem:[#allocation7 + $0x38] sm:$0xff] }
  0x11   :  { %162 = vmatpush.msra.mxu2 %v78_v1  ;;  %191 = vmatpush.msra.mxu3 %v78_v1  ;;  %v63_v8 = vld [vmem:[#allocation7 + $0x8] sm:$0xff]  ;;  %v65_v9 = vld [vmem:[#allocation7 + $0x18] sm:$0xff]  ;;  %v74_v10 = vld [vmem:[#allocation7 + $0x60] sm:$0xff] }
  0x12   :  { %545 = vmatmul.msk.f32.vlgmr.msra.gmra.mxu2 %vm82_vm0, %v66_v2  ;;  %547 = vmatmul.msk.f32.vlgmr.msra.gmra.mxu3 %vm82_vm0, %v68_v3  ;;  %v76_v11 = vld [vmem:[#allocation7 + $0x70] sm:$0xff]  ;;  %v70_v12 = vld [vmem:[#allocation7 + $0x40] sm:$0xff]  ;;  %v75_v14 = vld [vmem:[#allocation7 + $0x68] sm:$0xff] }
  0x13   :  { %104 = vmatpush.msra.mxu0 %v78_v1  ;;  %133 = vmatpush.msra.mxu1 %v78_v1  ;;  %v72_v13 = vld [vmem:[#allocation7 + $0x50] sm:$0xff]  ;;  %v77_v15 = vld [vmem:[#allocation7 + $0x78] sm:$0xff]  ;;  %v71_v16 = vld [vmem:[#allocation7 + $0x48] sm:$0xff] }
  0x14   :  { %541 = vmatmul.msk.f32.vlgmr.msra.gmra.mxu0 %vm82_vm0, %v62_v4  ;;  %543 = vmatmul.msk.f32.vlgmr.msra.gmra.mxu1 %vm82_vm0, %v64_v5  ;;  %v73_v17 = vld [vmem:[#allocation7 + $0x58] sm:$0xff]  ;;  %v80_v24 = vld [vmem:[#allocation2] sm:$0xff]  ;;  %v81_v29 = vld [vmem:[#allocation2 + $0x8] sm:$0xff] }
  0x15   :  { %277 = vmatpush.msrb.mxu2 %v79_v0  ;;  %306 = vmatpush.msrb.mxu3 %v79_v0 }
  0x16   :  { %219 = vmatpush.msrb.mxu0 %v79_v0  ;;  %248 = vmatpush.msrb.mxu1 %v79_v0 }
  0x17   :  { %278 = vmatpush.msrb.mxu2 %v78_v1  ;;  %307 = vmatpush.msrb.mxu3 %v78_v1 }
  0x18   :  { %220 = vmatpush.msrb.mxu0 %v78_v1  ;;  %249 = vmatpush.msrb.mxu1 %v78_v1 }
  0x1a   :  { %546 = vmatmul.msk.f32.gmra.mxu2 %vm82_vm0, %v67_v6  ;;  %548 = vmatmul.msk.f32.gmra.mxu3 %vm82_vm0, %v69_v7 }
  0x1c   :  { %542 = vmatmul.msk.f32.gmra.mxu0 %vm82_vm0, %v63_v8  ;;  %544 = vmatmul.msk.f32.gmra.mxu1 %vm82_vm0, %v65_v9 }
  0x22   :  { %553 = vmatmul.msk.f32.vlgmr.msrb.gmra.mxu2 %vm82_vm0, %v74_v10  ;;  %555 = vmatmul.msk.f32.vlgmr.msrb.gmra.mxu3 %vm82_vm0, %v76_v11 }
  0x24   :  { %549 = vmatmul.msk.f32.vlgmr.msrb.gmra.mxu0 %vm82_vm0, %v70_v12  ;;  %551 = vmatmul.msk.f32.vlgmr.msrb.gmra.mxu1 %vm82_vm0, %v72_v13 }
  0x2a   :  { %554 = vmatmul.msk.f32.gmra.mxu2 %vm82_vm0, %v75_v14  ;;  %556 = vmatmul.msk.f32.gmra.mxu3 %vm82_vm0, %v77_v15 }
  0x2c   :  { %550 = vmatmul.msk.f32.gmra.mxu0 %vm82_vm0, %v71_v16  ;;  %552 = vmatmul.msk.f32.gmra.mxu1 %vm82_vm0, %v73_v17 }
  0x91   :  { %v106_v18 = vpop.f32.mrf.mxu0  ;;  %v135_v19 = vpop.f32.mrf.mxu1 }
  0x95   :  { %v164_v20 = vpop.f32.mrf.mxu2  ;;  %v193_v21 = vpop.f32.mrf.mxu3 }
  0x99   :  { %v109_v22 = vpop.f32.mrf.mxu0  ;;  %v138_v23 = vpop.f32.mrf.mxu1 }
  0x9a   :  { %335 = vmatpush.msra.mxu0 %v109_v22  ;;  %358 = vmatpush.msra.mxu1 %v138_v23 }
  0x9c   :  { %336 = vmatpush.msra.mxu0 %v106_v18  ;;  %359 = vmatpush.msra.mxu1 %v135_v19 }
  0x9d   :  { %v167_v25 = vpop.f32.mrf.mxu2  ;;  %v196_v26 = vpop.f32.mrf.mxu3  ;;  %557 = vmatmul.msk.f32.vlgmr.msra.gmra.mxu0 %vm82_vm0, %v80_v24  ;;  %559 = vmatmul.msk.f32.vlgmr.msra.gmra.mxu1 %vm82_vm0, %v80_v24 }
  0x9e   :  { %381 = vmatpush.msra.mxu2 %v167_v25  ;;  %404 = vmatpush.msra.mxu3 %v196_v26 }
  0xa0   :  { %382 = vmatpush.msra.mxu2 %v164_v20  ;;  %405 = vmatpush.msra.mxu3 %v193_v21 }
  0xa1   :  { %v222_v27 = vpop.f32.mrf.mxu0  ;;  %v251_v28 = vpop.f32.mrf.mxu1  ;;  %561 = vmatmul.msk.f32.vlgmr.msra.gmra.mxu2 %vm82_vm0, %v80_v24  ;;  %563 = vmatmul.msk.f32.vlgmr.msra.gmra.mxu3 %vm82_vm0, %v80_v24 }
  0xa5   :  { %v280_v30 = vpop.f32.mrf.mxu2  ;;  %v309_v31 = vpop.f32.mrf.mxu3  ;;  %558 = vmatmul.msk.f32.gmra.mxu0 %vm82_vm0, %v81_v29  ;;  %560 = vmatmul.msk.f32.gmra.mxu1 %vm82_vm0, %v81_v29 }
  0xa9   :  { %v225_v32 = vpop.f32.mrf.mxu0  ;;  %v254_v33 = vpop.f32.mrf.mxu1  ;;  %562 = vmatmul.msk.f32.gmra.mxu2 %vm82_vm0, %v81_v29  ;;  %564 = vmatmul.msk.f32.gmra.mxu3 %vm82_vm0, %v81_v29 }
  0xaa   :  { %427 = vmatpush.msrb.mxu0 %v225_v32  ;;  %450 = vmatpush.msrb.mxu1 %v254_v33 }
  0xac   :  { %428 = vmatpush.msrb.mxu0 %v222_v27  ;;  %451 = vmatpush.msrb.mxu1 %v251_v28 }
  0xad   :  { %v283_v34 = vpop.f32.mrf.mxu2  ;;  %v312_v35 = vpop.f32.mrf.mxu3  ;;  %565 = vmatmul.msk.f32.vlgmr.msrb.gmra.mxu0 %vm82_vm0, %v80_v24  ;;  %567 = vmatmul.msk.f32.vlgmr.msrb.gmra.mxu1 %vm82_vm0, %v80_v24 }
  0xae   :  { %473 = vmatpush.msrb.mxu2 %v283_v34  ;;  %496 = vmatpush.msrb.mxu3 %v312_v35 }
  0xb0   :  { %474 = vmatpush.msrb.mxu2 %v280_v30  ;;  %497 = vmatpush.msrb.mxu3 %v309_v31 }
  0xb1   :  { %569 = vmatmul.msk.f32.vlgmr.msrb.gmra.mxu2 %vm82_vm0, %v80_v24  ;;  %571 = vmatmul.msk.f32.vlgmr.msrb.gmra.mxu3 %vm82_vm0, %v80_v24 }
  0xb5   :  { %566 = vmatmul.msk.f32.gmra.mxu0 %vm82_vm0, %v81_v29  ;;  %568 = vmatmul.msk.f32.gmra.mxu1 %vm82_vm0, %v81_v29 }
  0xb9   :  { %570 = vmatmul.msk.f32.gmra.mxu2 %vm82_vm0, %v81_v29  ;;  %572 = vmatmul.msk.f32.gmra.mxu3 %vm82_vm0, %v81_v29 }
 0x11a   :  { %v338_v36 = vpop.f32.mrf.mxu0  ;;  %v361_v37 = vpop.f32.mrf.mxu1 }
 0x11b   :  { %505 = vst.msk [vmem:[#allocation8] sm:$0xff] %vm82_vm0, %v338_v36 }
 0x11c   :  { %507 = vst.msk [vmem:[#allocation8 + $0x10] sm:$0xff] %vm82_vm0, %v361_v37 }
 0x122   :  { %v341_v38 = vpop.f32.mrf.mxu0  ;;  %v364_v39 = vpop.f32.mrf.mxu1 }
 0x123   :  { %506 = vst.msk [vmem:[#allocation8 + $0x8] sm:$0xff] %vm82_vm0, %v341_v38 }
 0x124   :  { %v384_v40 = vpop.f32.mrf.mxu2  ;;  %v407_v41 = vpop.f32.mrf.mxu3  ;;  %508 = vst.msk [vmem:[#allocation8 + $0x18] sm:$0xff] %vm82_vm0, %v364_v39 }
 0x125   :  { %509 = vst.msk [vmem:[#allocation8 + $0x20] sm:$0xff] %vm82_vm0, %v384_v40 }
 0x126   :  { %511 = vst.msk [vmem:[#allocation8 + $0x30] sm:$0xff] %vm82_vm0, %v407_v41 }
 0x12a   :  { %v430_v42 = vpop.f32.mrf.mxu0  ;;  %v453_v43 = vpop.f32.mrf.mxu1 }
 0x12b   :  { %513 = vst.msk [vmem:[#allocation8 + $0x40] sm:$0xff] %vm82_vm0, %v430_v42 }
 0x12c   :  { %v387_v44 = vpop.f32.mrf.mxu2  ;;  %v410_v45 = vpop.f32.mrf.mxu3  ;;  %515 = vst.msk [vmem:[#allocation8 + $0x50] sm:$0xff] %vm82_vm0, %v453_v43 }
 0x12d   :  { %510 = vst.msk [vmem:[#allocation8 + $0x28] sm:$0xff] %vm82_vm0, %v387_v44 }
 0x12e   :  { %512 = vst.msk [vmem:[#allocation8 + $0x38] sm:$0xff] %vm82_vm0, %v410_v45 }
 0x132   :  { %v433_v46 = vpop.f32.mrf.mxu0  ;;  %v456_v47 = vpop.f32.mrf.mxu1 }
 0x133   :  { %514 = vst.msk [vmem:[#allocation8 + $0x48] sm:$0xff] %vm82_vm0, %v433_v46 }
 0x134   :  { %v476_v48 = vpop.f32.mrf.mxu2  ;;  %v499_v49 = vpop.f32.mrf.mxu3  ;;  %516 = vst.msk [vmem:[#allocation8 + $0x58] sm:$0xff] %vm82_vm0, %v456_v47 }
 0x135   :  { %517 = vst.msk [vmem:[#allocation8 + $0x60] sm:$0xff] %vm82_vm0, %v476_v48 }
 0x136   :  { %519 = vst.msk [vmem:[#allocation8 + $0x70] sm:$0xff] %vm82_vm0, %v499_v49 }
 0x13c   :  { %v479_v50 = vpop.f32.mrf.mxu2  ;;  %v502_v51 = vpop.f32.mrf.mxu3 }
 0x13d   :  { %518 = vst.msk [vmem:[#allocation8 + $0x68] sm:$0xff] %vm82_vm0, %v479_v50 }
 0x13e   :  { %520 = vst.msk [vmem:[#allocation8 + $0x78] sm:$0xff] %vm82_vm0, %v502_v51 }
 0x13f   :  { %533 = dma.vmem_to_hbm [thread:$0]  %s526_s27, 2048, %s528_s30, [#allocation4], %s682_s20, %s682_s20, %s683_s21  }
 0x140   :  { %679 = dma.done.wait [#allocation4], 2048  }
 0x141   :  { %680 = vsyncadd [#allocation4], 4294965248 }
 0x142   :  { %538 = vsyncpa [#allocation3], 1 }
 0x143   :  { %539 = vsyncpa [#allocation6], 1 }
 0x144   :  { %540 = vsyncpa [#allocation4], 1 }

</bundles_post_ra>
